<compile_context>
chip_gen: v6e
topology: v6e:2x2x1
jax: 0.10.0
libtpu: 0.0.40
codegen_flags: <defaults>
</compile_context>

<pallas_src>
import functools

import jax
import jax.numpy as jnp
from jax.experimental import pallas as pl
from jax.experimental.pallas import tpu as pltpu

_LANE = 128          # vreg lane width
_SUBLANE_F32 = 8     # f32 sublane pack
_SUBLANE_BF16 = 16   # bf16 packs two rows per sublane


def _round_up(x, m):
    return (x + m - 1) // m * m


def _fused_linear_kernel(x_ref, w_ref, b_ref, o_ref):
    # Single affine map: o = x @ W + b
    # W is already laid out (F_pad, O_pad) -> no in-kernel transpose.
    acc = jnp.dot(x_ref[...], w_ref[...], preferred_element_type=jnp.float32)
    o_ref[...] = (acc + b_ref[...]).astype(o_ref.dtype)   # bias add stays f32


def prepare_params(w1, b1, w2, b2, *, use_bf16=True):
    """One-time parameter prep (fold Linear->Linear, pad, cast). Cache the result.

    w1: (hidden, in_features), b1: (hidden,)      -- PyTorch nn.Linear layout
    w2: (out_features, hidden), b2: (out_features,)
    returns: w_p (F_pad, O_pad) in op dtype, b_p (1, O_pad) f32
    """
    hp = jax.lax.Precision.HIGHEST
    w1f = w1.astype(jnp.float32)
    b1f = b1.astype(jnp.float32)
    w2f = w2.astype(jnp.float32)
    b2f = b2.astype(jnp.float32)

    # y = (x @ W1^T + b1) @ W2^T + b2 = x @ (W1^T @ W2^T) + (b1 @ W2^T + b2)
    w_fused = jnp.dot(w1f.T, w2f.T, precision=hp)          # (F, O), fold kept in f32 HIGHEST
    b_fused = jnp.dot(b1f, w2f.T, precision=hp) + b2f      # (O,)

    F, O = w_fused.shape
    F_pad = _round_up(F, _LANE)
    O_pad = _round_up(O, _LANE)
    op_dtype = jnp.bfloat16 if use_bf16 else jnp.float32

    w_p = jnp.zeros((F_pad, O_pad), op_dtype).at[:F, :O].set(w_fused.astype(op_dtype))
    b_p = jnp.zeros((1, O_pad), jnp.float32).at[0, :O].set(b_fused)
    return w_p, b_p


@functools.partial(jax.jit, static_argnames=("out_features", "use_bf16", "batch_tile"))
def fashion_mnist_forward(x_nchw, w_p, b_p, *, out_features, use_bf16=True, batch_tile=512):
    """Forward pass equivalent to FashionMNISTModel.forward.

    x_nchw: (B, C, H, W) float32
    w_p, b_p: from prepare_params (must be built with the same use_bf16)
    returns: (B, out_features) float32
    """
    B = x_nchw.shape[0]
    x_flat = x_nchw.reshape(B, -1)                         # nn.Flatten (row-major, same as torch)
    F = x_flat.shape[1]
    F_pad, O_pad = w_p.shape
    op_dtype = jnp.bfloat16 if use_bf16 else jnp.float32

    # Cast (and, only if needed, feature-pad) x; fuses into one HBM pass under jit.
    x_in = x_flat.astype(op_dtype)
    if F_pad != F:
        x_in = jnp.pad(x_in, ((0, 0), (0, F_pad - F)))

    # Batch tile: multiple of the sublane pack; capped so large batches give >= 2 grid
    # steps (both TensorCores on v7x). No explicit batch padding: partial last block is
    # handled by Pallas block masking and the output shape is exactly (B, O_pad).
    sub = _SUBLANE_BF16 if (use_bf16 and B >= _SUBLANE_BF16) else _SUBLANE_F32
    bt = _round_up(min(batch_tile, B), sub)
    if B >= 2 * sub:
        bt = min(bt, _round_up(-(-B // 2), sub))           # ceil(B/2) -> at least 2 steps
    grid = (pl.cdiv(B, bt),)

    out_dtype = jnp.bfloat16 if use_bf16 else jnp.float32  # bf16 store halves write stream

    flops = 2 * B * F_pad * O_pad
    bytes_accessed = (B * F_pad * jnp.dtype(op_dtype).itemsize
                      + w_p.size * w_p.dtype.itemsize
                      + b_p.size * 4
                      + B * O_pad * jnp.dtype(out_dtype).itemsize)

    out_padded = pl.pallas_call(
        _fused_linear_kernel,
        out_shape=jax.ShapeDtypeStruct((B, O_pad), out_dtype),
        grid=grid,
        in_specs=[
            pl.BlockSpec((bt, F_pad), lambda i: (i, 0)),     # x tile per grid step
            pl.BlockSpec((F_pad, O_pad), lambda i: (0, 0)),  # folded weight, resident in VMEM
            pl.BlockSpec((1, O_pad), lambda i: (0, 0)),      # folded bias, resident in VMEM
        ],
        out_specs=pl.BlockSpec((bt, O_pad), lambda i: (i, 0)),
        compiler_params=pltpu.CompilerParams(
            dimension_semantics=("parallel",)),              # batch tiles independent -> megacore
        cost_estimate=pl.CostEstimate(
            flops=flops, transcendentals=0, bytes_accessed=bytes_accessed),
    )(x_in, w_p, b_p)

    # Slice away lane padding, upcast the tiny result to f32.
    return out_padded[:, :out_features].astype(jnp.float32)


def _torch_linear_init(key, out_f, in_f):
    """Deterministic init matching nn.Linear's U(-1/sqrt(in), 1/sqrt(in)) scheme."""
    kw, kb = jax.random.split(key)
    bound = 1.0 / jnp.sqrt(jnp.float32(in_f))
    w = jax.random.uniform(kw, (out_f, in_f), jnp.float32, -bound, bound)
    b = jax.random.uniform(kb, (out_f,), jnp.float32, -bound, bound)
    return w, b


def _reference(x_nchw, w1, b1, w2, b2):
    x = x_nchw.reshape(x_nchw.shape[0], -1)
    h = x @ w1.T + b1
    return h @ w2.T + b2


if __name__ == "__main__":
    # Shapes consistent with the module: batch=8, 1 channel, 16x16 image
    # -> input_shape = 256, hidden_units = 32, output_shape = 10
    B, C, H, W = 8, 1, 16, 16
    input_shape = C * H * W
    hidden_units = 32
    output_shape = 10

    key = jax.random.PRNGKey(0)
    kx, k1, k2 = jax.random.split(key, 3)

    x = jax.random.normal(kx, (B, C, H, W), jnp.float32)
    w1, b1 = _torch_linear_init(k1, hidden_units, input_shape)
    w2, b2 = _torch_linear_init(k2, output_shape, hidden_units)

    ref = _reference(x, w1, b1, w2, b2)

    # ---- f32 operand path: tight semantics check against the PyTorch-style reference ----
    w_p32, b_p32 = prepare_params(w1, b1, w2, b2, use_bf16=False)   # one-time prep, reused below
    out_f32 = jax.block_until_ready(
        fashion_mnist_forward(x, w_p32, b_p32, out_features=output_shape, use_bf16=False))
    assert out_f32.shape == (B, output_shape)
    assert jnp.allclose(out_f32, ref, atol=1e-3, rtol=1e-3)

    # ---- bf16 operand path (MXU-native on all gens; f32 accumulation + f32 bias add) ----
    w_pbf, b_pbf = prepare_params(w1, b1, w2, b2, use_bf16=True)
    out_bf16 = jax.block_until_ready(
        fashion_mnist_forward(x, w_pbf, b_pbf, out_features=output_shape, use_bf16=True))
    assert out_bf16.shape == (B, output_shape)
    assert jnp.allclose(out_bf16, ref, atol=5e-2, rtol=5e-2)

    # ---- Larger, non-multiple batch: multi-step parallel grid + partial last block ----
    B2 = 200
    x2 = jax.random.normal(jax.random.PRNGKey(1), (B2, C, H, W), jnp.float32)
    ref2 = _reference(x2, w1, b1, w2, b2)
    out2 = jax.block_until_ready(
        fashion_mnist_forward(x2, w_p32, b_p32, out_features=output_shape,
                              use_bf16=False, batch_tile=64))
    assert out2.shape == (B2, output_shape)
    assert jnp.allclose(out2, ref2, atol=1e-3, rtol=1e-3)

    # Same large batch on the bf16 path (exercises bf16 sublane-16 tiling + bf16 output store).
    out2_bf = jax.block_until_ready(
        fashion_mnist_forward(x2, w_pbf, b_pbf, out_features=output_shape,
                              use_bf16=True, batch_tile=64))
    assert out2_bf.shape == (B2, output_shape)
    assert jnp.allclose(out2_bf, ref2, atol=5e-2, rtol=5e-2)

    print("KERNEL_OK")
</pallas_src>

<mosaic_0001>
module attributes {stable_mosaic.version = 11 : i64} {
  func.func @_fused_linear_kernel(%arg0: i32, %arg1: memref<8x256xf32, #tpu.memory_space<vmem>>, %arg2: memref<256x128xf32, #tpu.memory_space<vmem>>, %arg3: memref<1x128xf32, #tpu.memory_space<vmem>>, %arg4: memref<8x128xf32, #tpu.memory_space<vmem>>) attributes {dimension_semantics = [#tpu.dimension_semantics<parallel>], iteration_bounds = array<i64: 1>, scalar_prefetch = 0 : i64, scratch_operands = 0 : i64, tpu.core_type = #tpu.core_type<tc>, window_params = [{transform_indices = @transform_0, window_bounds = array<i64: 8, 256>}, {pipeline_mode = #tpu.pipeline_mode<synchronous>, transform_indices = @transform_1, window_bounds = array<i64: 256, 128>}, {pipeline_mode = #tpu.pipeline_mode<synchronous>, transform_indices = @transform_2, window_bounds = array<i64: 1, 128>}, {transform_indices = @transform_3, window_bounds = array<i64: 8, 128>}]} {
    %c0 = arith.constant 0 : index
    %c0_0 = arith.constant 0 : index
    %0 = vector.load %arg1[%c0, %c0_0] : memref<8x256xf32, #tpu.memory_space<vmem>>, vector<8x256xf32>
    %c0_1 = arith.constant 0 : index
    %c0_2 = arith.constant 0 : index
    %1 = vector.load %arg2[%c0_1, %c0_2] : memref<256x128xf32, #tpu.memory_space<vmem>>, vector<256x128xf32>
    %cst = arith.constant dense<0.000000e+00> : vector<8x128xf32>
    %2 = tpu.matmul %0, %1, %cst {dimension_numbers = #tpu.dot_dimension_numbers<[1], [0], [0], [1], [0, 0, 1, 1], [], []>} : vector<8x256xf32>, vector<256x128xf32>, vector<8x128xf32> -> vector<8x128xf32>
    %c0_3 = arith.constant 0 : index
    %c0_4 = arith.constant 0 : index
    %3 = vector.load %arg3[%c0_3, %c0_4] : memref<1x128xf32, #tpu.memory_space<vmem>>, vector<1x128xf32>
    %4 = vector.broadcast %3 : vector<1x128xf32> to vector<8x128xf32>
    %5 = arith.addf %2, %4 : vector<8x128xf32>
    %c0_5 = arith.constant 0 : index
    %c0_6 = arith.constant 0 : index
    %6 = vector.load %arg4[%c0_5, %c0_6] : memref<8x128xf32, #tpu.memory_space<vmem>>, vector<8x128xf32>
    tpu.vector_store %arg4[%c0_5, %c0_6], %5 {strides = array<i32>} : memref<8x128xf32, #tpu.memory_space<vmem>>, vector<8x128xf32>,
    return
  }
  func.func @transform_0(%arg0: i32) -> (i32, i32) {
    %c0_i32 = arith.constant 0 : i32
    %c0_i32_0 = arith.constant 0 : i32
    return %arg0, %c0_i32 : i32, i32
  }
  func.func @transform_1(%arg0: i32) -> (i32, i32) {
    %c0_i32 = arith.constant 0 : i32
    %c0_i32_0 = arith.constant 0 : i32
    %c0_i32_1 = arith.constant 0 : i32
    return %c0_i32, %c0_i32_0 : i32, i32
  }
  func.func @transform_2(%arg0: i32) -> (i32, i32) {
    %c0_i32 = arith.constant 0 : i32
    %c0_i32_0 = arith.constant 0 : i32
    %c0_i32_1 = arith.constant 0 : i32
    return %c0_i32, %c0_i32_0 : i32, i32
  }
  func.func @transform_3(%arg0: i32) -> (i32, i32) {
    %c0_i32 = arith.constant 0 : i32
    %c0_i32_0 = arith.constant 0 : i32
    return %arg0, %c0_i32 : i32, i32
  }
}

</mosaic_0001>

<bundles_post_ra>
// kernel: fashion_mnist_forward.1
= control target key start
LH: loop header
LB: loop body
LE: loop exit
PB: predicated region body
PF: predicated region fallthrough
CT: control target
= control target key end

     0   :  { %8 = vsyncpa [#allocation3], 0  ;;  %s279_s0 = inlined_call_operand.vmem [shape: f32[8,256], index: 0, kind: input, shape index: {}]   ;;  %s280_s1 = inlined_call_operand.hbm [shape: f32[256,128], index: 1, kind: input, shape index: {}]   ;;  %s281_s2 = inlined_call_operand.vmem [shape: f32[1,128], index: 2, kind: input, shape index: {}]   ;;  %s282_s3 = inlined_call_operand.hbm [shape: f32[8,128], index: 3, kind: output, shape index: {}]  }
   0x1   :  { %9 = vsyncpa [#allocation4], 0  ;;  %s240_s12 = smov [#allocation2]  }
   0x2   :  { %s17_s13 = sshll.u32 %s240_s12, 4  ;;  %s18_s13 = int_to_ptr.vmem [resolvable:$true] %s17_s13 }
   0x3   :  { %s204_s14 = scalar_lea.vmem %s18_s13, 4096  ;;  %p209_p1 = scmp.lt.s32.totalorder %s18_s13, %s18_s13 }
   0x4   :  { %p205_p0 = scmp.ne.s32.totalorder %s18_s13, %s204_s14  ;;  %p210_p2 = scmp.lt.s32.totalorder %s204_s14, %s204_s14 }
   0x6   :  { %p211_p3 = por %p210_p2, %p209_p1 }
   0x8   :  { %p212_p4 = pnand %p211_p3, %p205_p0 }
   0xa   :  { %215 = shalt.err (!%p212_p4)
}
   0xb   :  { %s241_s15 = smov 128   ;;  %s242_s16 = smov 8  }
   0xc   :  { %23 = dma.hbm_to_vmem [thread:$0]  %s280_s1, 4096, %s18_s13, [#allocation3], %s241_s15, %s241_s15, %s242_s16  }
   0xd   :  { %236 = dma.done.wait [#allocation3], 4096  }
   0xe   :  { %237 = vsyncadd [#allocation3], 4294963200  ;;  %v62_v0 = vld [vmem:[#allocation2 + $0xf8] sm:$0xff]  ;;  %v61_v2 = vld [vmem:[#allocation2 + $0xf0] sm:$0xff]  ;;  %s243_s24 = smov [#allocation5]  }
   0xf   :  { %v46_v1 = vld [vmem:[#allocation2 + $0x78] sm:$0xff]  ;;  %157 = vmatprep.subr.mxu0 %v62_v0  ;;  %v45_v3 = vld [vmem:[#allocation2 + $0x70] sm:$0xff]  ;;  %v60_v4 = vld [vmem:[#allocation2 + $0xe8] sm:$0xff]  ;;  %s147_s25 = sshll.u32 %s243_s24, 4  ;;  %s148_s25 = int_to_ptr.vmem [resolvable:$true] %s147_s25 }
  0x10   :  { %158 = vmatpush3.msra.mxu0 %v46_v1  ;;  %v44_v5 = vld [vmem:[#allocation2 + $0x68] sm:$0xff]  ;;  %v59_v6 = vld [vmem:[#allocation2 + $0xe0] sm:$0xff]  ;;  %v58_v8 = vld [vmem:[#allocation2 + $0xd8] sm:$0xff]  ;;  %s216_s26 = scalar_lea.vmem %s148_s25, 128  ;;  %p221_p6 = scmp.lt.s32.totalorder %s148_s25, %s148_s25 }
  0x11   :  { %159 = vmatprep.subr.mxu0 %v61_v2  ;;  %v43_v7 = vld [vmem:[#allocation2 + $0x60] sm:$0xff]  ;;  %v42_v9 = vld [vmem:[#allocation2 + $0x58] sm:$0xff]  ;;  %v57_v10 = vld [vmem:[#allocation2 + $0xd0] sm:$0xff]  ;;  %p217_p5 = scmp.ne.s32.totalorder %s148_s25, %s216_s26  ;;  %p222_p7 = scmp.lt.s32.totalorder %s216_s26, %s216_s26 }
  0x12   :  { %160 = vmatpush3.msra.mxu0 %v45_v3  ;;  %v41_v11 = vld [vmem:[#allocation2 + $0x50] sm:$0xff]  ;;  %v56_v12 = vld [vmem:[#allocation2 + $0xc8] sm:$0xff]  ;;  %v55_v15 = vld [vmem:[#allocation2 + $0xc0] sm:$0xff] }
  0x13   :  { %161 = vmatprep.subr.mxu0 %v60_v4  ;;  %v30_v13 = vld [vmem:[%s279_s0 + $0x8] sm:$0xff]  ;;  %v39_v16 = vld [vmem:[#allocation2 + $0x40] sm:$0xff]  ;;  %v54_v17 = vld [vmem:[#allocation2 + $0xb8] sm:$0xff]  ;;  %p223_p8 = por %p222_p7, %p221_p6 }
  0x14   :  { %162 = vmatpush3.msra.mxu0 %v44_v5  ;;  %v40_v14 = vld [vmem:[#allocation2 + $0x48] sm:$0xff]  ;;  %134 = vmatprep.mubr.f32.mxu0 %v30_v13  ;;  %v38_v18 = vld [vmem:[#allocation2 + $0x38] sm:$0xff]  ;;  %v53_v19 = vld [vmem:[#allocation2 + $0xb0] sm:$0xff] }
  0x15   :  { %163 = vmatprep.subr.mxu0 %v59_v6  ;;  %v37_v20 = vld [vmem:[#allocation2 + $0x30] sm:$0xff]  ;;  %v52_v21 = vld [vmem:[#allocation2 + $0xa8] sm:$0xff]  ;;  %v51_v23 = vld [vmem:[#allocation2 + $0xa0] sm:$0xff]  ;;  %p224_p9 = pnand %p223_p8, %p217_p5 }
  0x16   :  { %164 = vmatpush3.msra.mxu0 %v43_v7  ;;  %v36_v22 = vld [vmem:[#allocation2 + $0x28] sm:$0xff]  ;;  %v35_v24 = vld [vmem:[#allocation2 + $0x20] sm:$0xff]  ;;  %v50_v25 = vld [vmem:[#allocation2 + $0x98] sm:$0xff] }
  0x17   :  { %165 = vmatprep.subr.mxu0 %v58_v8  ;;  %v34_v26 = vld [vmem:[#allocation2 + $0x18] sm:$0xff]  ;;  %v49_v27 = vld [vmem:[#allocation2 + $0x90] sm:$0xff]  ;;  %v48_v29 = vld [vmem:[#allocation2 + $0x88] sm:$0xff] }
  0x18   :  { %166 = vmatpush3.msra.mxu0 %v42_v9  ;;  %v33_v28 = vld [vmem:[#allocation2 + $0x10] sm:$0xff]  ;;  %v32_v30 = vld [vmem:[#allocation2 + $0x8] sm:$0xff]  ;;  %v47_v31 = vld [vmem:[#allocation2 + $0x80] sm:$0xff] }
  0x19   :  { %167 = vmatprep.subr.mxu0 %v57_v10  ;;  %v31_v32 = vld [vmem:[#allocation2] sm:$0xff] }
  0x1a   :  { %168 = vmatpush3.msra.mxu0 %v41_v11  ;;  %v29_v33 = vld [vmem:[%s279_s0] sm:$0xff] }
  0x1b   :  { %169 = vmatprep.subr.mxu0 %v56_v12  ;;  %v156_v35 = vld [vmem:[%s281_s2] ss:$0 sm:$0xff] }
  0x1c   :  { %170 = vmatpush3.msra.mxu0 %v40_v14 }
  0x1d   :  { %171 = vmatprep.subr.mxu0 %v55_v15 }
  0x1e   :  { %172 = vmatpush3.msra.mxu0 %v39_v16 }
  0x1f   :  { %173 = vmatprep.subr.mxu0 %v54_v17 }
  0x20   :  { %174 = vmatpush3.msra.mxu0 %v38_v18 }
  0x21   :  { %175 = vmatprep.subr.mxu0 %v53_v19 }
  0x22   :  { %176 = vmatpush3.msra.mxu0 %v37_v20 }
  0x23   :  { %177 = vmatprep.subr.mxu0 %v52_v21 }
  0x24   :  { %178 = vmatpush3.msra.mxu0 %v36_v22 }
  0x25   :  { %179 = vmatprep.subr.mxu0 %v51_v23 }
  0x26   :  { %180 = vmatpush3.msra.mxu0 %v35_v24 }
  0x27   :  { %181 = vmatprep.subr.mxu0 %v50_v25 }
  0x28   :  { %182 = vmatpush3.msra.mxu0 %v34_v26 }
  0x29   :  { %183 = vmatprep.subr.mxu0 %v49_v27 }
  0x2a   :  { %184 = vmatpush3.msra.mxu0 %v33_v28 }
  0x2b   :  { %185 = vmatprep.subr.mxu0 %v48_v29 }
  0x2c   :  { %186 = vmatpush3.msra.mxu0 %v32_v30 }
  0x2d   :  { %187 = vmatprep.subr.mxu0 %v47_v31 }
  0x2e   :  { %188 = vmatpush3.msra.mxu0 %v31_v32 }
  0x2f   :  { %135 = vmatmul.mubr.f32.vlgmr.msra.gmra.mxu0 %v29_v33 }
  0xef   :  { %v189_v34 = vpop.f32.mrf.mxu0 }
  0xf1   :  { %v190_v36 = vpop.f32.mrf.mxu0 }
  0xf2   :  { %v191_v37 = vadd.f32 %v190_v36, %v189_v34 }
  0xf4   :  { %v137_v38 = vadd.f32 %v191_v37, %v156_v35 }
  0xf6   :  { %140 = vst [vmem:[#allocation5] sm:$0xff] %v137_v38 }
  0xf7   :  { %227 = shalt.err (!%p224_p9)
}
  0xf8   :  { %150 = dma.vmem_to_hbm [thread:$0]  %s148_s25, 128, %s282_s3, [#allocation4]  }
  0xf9   :  { %238 = dma.done.wait [#allocation4], 128  }
  0xfa   :  { %239 = vsyncadd [#allocation4], 4294967168 }
  0xfb   :  { %154 = vsyncpa [#allocation3], 1 }
  0xfc   :  { %155 = vsyncpa [#allocation4], 1 }

</bundles_post_ra>
